<compile_context>
chip_gen: v6e
topology: v6e:2x2x1
jax: 0.10.0
libtpu: 0.0.40
codegen_flags: <defaults>
</compile_context>

<pallas_src>
import functools

import jax
import jax.numpy as jnp
from jax import lax
from jax.experimental import pallas as pl
from jax.experimental.pallas import tpu as pltpu


# ----------------------------- Pallas kernel --------------------------------

def _rb_kernel(x_ref, w1_ref, b1_ref, w2_ref, b2_ref, o_ref, a1_ref, a2_ref,
               *, nb, d):
    """Fused RB forward for a block of `nb` batch elements.

    x_ref  : (nb*d, L)   lane-dense NDHWC activations, L = H*W*C
    w*_ref : (3L, L)     stacked lowered-conv weights (bf16), taps along K
    b*_ref : (1, L)      bias tiled over (H, W), f32
    o_ref  : (nb*d, L)
    a*_ref : (nb*d, 3L)  f32 VMEM scratch: im2col LHS for conv1 / conv2
    """
    l = x_ref.shape[1]
    zrow = jnp.zeros((1, l), jnp.float32)      # hoisted, reused by both convs

    def build_im2col(a_ref, v):
        # Center tap (kd=1): one full, lane- and sublane-aligned (M, L) store.
        a_ref[:, pl.ds(l, l)] = v
        for n in range(nb):                    # static unroll; nb is small
            r = n * d
            # Depth zero-padding: only 2 single rows per element per conv.
            a_ref[pl.ds(r, 1), pl.ds(0, l)] = zrow              # kd=0, dd=0
            a_ref[pl.ds(r + d - 1, 1), pl.ds(2 * l, l)] = zrow  # kd=2, dd=D-1
            if d > 1:
                # kd=0 tap reads v[dd-1]  -> rows r+1 .. r+d-1
                a_ref[pl.ds(r + 1, d - 1), pl.ds(0, l)] = v[r:r + d - 1, :]
                # kd=2 tap reads v[dd+1]  -> rows r .. r+d-2
                a_ref[pl.ds(r, d - 1), pl.ds(2 * l, l)] = v[r + 1:r + d, :]

    def conv(a_ref, w_ref, b_ref):
        # Single K = 3L MXU matmul per conv (all 3 depth taps fused):
        # bf16 operands, f32 accumulation.  (1, L) bias broadcasts over rows.
        return jnp.dot(a_ref[...].astype(jnp.bfloat16), w_ref[...],
                       preferred_element_type=jnp.float32) + b_ref[...]

    xv = x_ref[...].astype(jnp.float32)        # (M, L); also the residual

    # conv1 + bias + ReLU (the CR block); h never leaves VMEM/vregs.
    build_im2col(a1_ref, xv)
    h = jnp.maximum(conv(a1_ref, w1_ref, b1_ref), 0.0)

    # conv2 + bias + residual + ReLU.
    build_im2col(a2_ref, h)
    y = jnp.maximum(conv(a2_ref, w2_ref, b2_ref) + xv, 0.0)
    o_ref[...] = y.astype(o_ref.dtype)


# ------------------------- weight lowering (one-time) ------------------------

def _lowered_conv_mats(w, H, W):
    """PyTorch Conv3d weight (Cout,Cin,3,3,3) -> stacked (3*H*W*Cin, H*W*Cout) bf16.

    For each depth tap kd the (L, L) block folds the kh/kw taps, the channel
    mixing and the H/W zero-padding:
      M[kd, (hi,wi,ci), (ho,wo,co)] = w[co, ci, kd, hi-ho+1, wi-wo+1]
                                      if |hi-ho| <= 1 and |wi-wo| <= 1 else 0
    The three taps are stacked along K so the kernel needs a single matmul.
    """
    Cout, Cin = w.shape[0], w.shape[1]
    wt = jnp.transpose(w, (2, 3, 4, 1, 0)).astype(jnp.float32)    # (kd,kh,kw,ci,co)
    dh = jnp.arange(H)[:, None] - jnp.arange(H)[None, :]          # hi - ho
    dw = jnp.arange(W)[:, None] - jnp.arange(W)[None, :]          # wi - wo
    kh = jnp.clip(dh + 1, 0, 2)
    kw = jnp.clip(dw + 1, 0, 2)
    g = wt[:, kh[:, :, None, None], kw[None, None, :, :], :, :]   # (kd,hi,ho,wi,wo,ci,co)
    mask = (jnp.abs(dh) <= 1)[:, :, None, None] & (jnp.abs(dw) <= 1)[None, None, :, :]
    g = jnp.where(mask[None, :, :, :, :, None, None], g, 0.0)
    m = jnp.transpose(g, (0, 1, 3, 5, 2, 4, 6))                   # (kd,hi,wi,ci,ho,wo,co)
    return m.reshape(3 * H * W * Cin, H * W * Cout).astype(jnp.bfloat16)


def prepare_rb_params(params, H, W):
    """Lower Conv3d weights / tile biases ONCE, outside the per-call path."""
    C = params["w1"].shape[0]
    L = H * W * C
    return {
        "w1": _lowered_conv_mats(params["w1"], H, W),                        # (3L, L) bf16
        "b1": jnp.tile(params["b1"].astype(jnp.float32), H * W).reshape(1, L),
        "w2": _lowered_conv_mats(params["w2"], H, W),
        "b2": jnp.tile(params["b2"].astype(jnp.float32), H * W).reshape(1, L),
    }


# ------------------------------- forward pass --------------------------------

_VMEM_BUDGET = 48 * 1024 * 1024     # conservative vs v7x's 64 MiB physical VMEM


def _pick_batch_block(n, d):
    """Batch elements per grid step: maximize MXU rows (capped at 512)."""
    cands = [nb for nb in range(1, n + 1)
             if n % nb == 0 and (nb == n or (nb * d) % 8 == 0)]
    good = [nb for nb in cands if nb * d <= 512]
    return max(good) if good else min(cands)


def rb_forward(x_ncdhw, prep):
    """RB.forward: relu(conv2(relu(conv1(x)+b1)) + b2 + x).  x: (N,C,D,H,W) f32."""
    N, C, D, H, W = x_ncdhw.shape
    L = H * W * C
    if L % 128 != 0:
        raise ValueError(f"lane dim H*W*C = {L} must be a multiple of 128 "
                         "(pad C or use the banded formulation)")

    Nb = _pick_batch_block(N, D)     # for the test: Nb = N -> single grid step
    M = Nb * D
    grid = (N // Nb,)

    # Explicit VMEM budget: resident weights dominate as L grows.
    weight_bytes = 2 * (3 * L) * L * 2            # two stacked bf16 matrices
    block_bytes = 2 * M * L * 4                   # x + o blocks (f32)
    scratch_bytes = 2 * M * 3 * L * 4             # two f32 im2col slabs
    est = 2 * (weight_bytes + block_bytes) + scratch_bytes + 2 * L * 4
    if est > _VMEM_BUDGET:
        raise ValueError(f"lowered-conv working set {est} B exceeds VMEM budget; "
                         "tile over output columns / use banded formulation")
    vmem_limit = int(min(_VMEM_BUDGET, max(4 * est, 16 * 1024 * 1024)))

    # NCDHW -> (N*D, H*W*C): channels fastest on the lane axis (lane-dense).
    x_flat = jnp.transpose(x_ncdhw, (0, 2, 3, 4, 1)).reshape(N * D, L)

    kernel = functools.partial(_rb_kernel, nb=Nb, d=D)
    out_flat = pl.pallas_call(
        kernel,
        out_shape=jax.ShapeDtypeStruct((N * D, L), x_ncdhw.dtype),
        grid=grid,
        in_specs=[
            pl.BlockSpec((M, L), lambda i: (i, 0)),        # x block (per batch blk)
            pl.BlockSpec((3 * L, L), lambda i: (0, 0)),    # W1  (constant index ->
            pl.BlockSpec((1, L), lambda i: (0, 0)),        # b1   fetched once and
            pl.BlockSpec((3 * L, L), lambda i: (0, 0)),    # W2   resident across
            pl.BlockSpec((1, L), lambda i: (0, 0)),        # b2   the grid)
        ],
        out_specs=pl.BlockSpec((M, L), lambda i: (i, 0)),
        scratch_shapes=[
            pltpu.VMEM((M, 3 * L), jnp.float32),           # im2col slab for conv1
            pltpu.VMEM((M, 3 * L), jnp.float32),           # im2col slab for conv2
        ],
        compiler_params=pltpu.CompilerParams(
            dimension_semantics=("parallel",),             # batch blocks independent
            vmem_limit_bytes=vmem_limit,
        ),
    )(x_flat, prep["w1"], prep["b1"], prep["w2"], prep["b2"])

    # (N*D, H*W*C) -> NCDHW
    return jnp.transpose(out_flat.reshape(N, D, H, W, C), (0, 4, 1, 2, 3))


# ---------------- pure-JAX reference (mirrors the PyTorch module) -------------

def _conv3d_ref(x, w, b):
    y = lax.conv_general_dilated(
        x, w, window_strides=(1, 1, 1),
        padding=((1, 1), (1, 1), (1, 1)),
        dimension_numbers=("NCDHW", "OIDHW", "NCDHW"),
        precision=lax.Precision.HIGHEST)
    return y + b[None, :, None, None, None]


def rb_ref(x, params):
    h = jnp.maximum(_conv3d_ref(x, params["w1"], params["b1"]), 0.0)
    y = _conv3d_ref(h, params["w2"], params["b2"])
    return jnp.maximum(y + x, 0.0)


def init_params(key, channels):
    # Deterministic init mimicking PyTorch's default Conv3d init bounds.
    k1, k2, k3, k4 = jax.random.split(key, 4)
    fan_in = channels * 27
    bound = 1.0 / float(fan_in) ** 0.5
    shape_w = (channels, channels, 3, 3, 3)
    return {
        "w1": jax.random.uniform(k1, shape_w, jnp.float32, -bound, bound),
        "b1": jax.random.uniform(k2, (channels,), jnp.float32, -bound, bound),
        "w2": jax.random.uniform(k3, shape_w, jnp.float32, -bound, bound),
        "b2": jax.random.uniform(k4, (channels,), jnp.float32, -bound, bound),
    }


if __name__ == "__main__":
    key = jax.random.PRNGKey(0)
    kx, kp = jax.random.split(key)
    N, C, D, H, W = 2, 4, 8, 8, 8           # small NCDHW input, like PyTorch
    x = jax.random.normal(kx, (N, C, D, H, W), jnp.float32)
    params = init_params(kp, C)

    prep = prepare_rb_params(params, H, W)  # lowered once, outside the jit'd forward
    out = jax.block_until_ready(jax.jit(rb_forward)(x, prep))
    ref = jax.block_until_ready(rb_ref(x, params))

    assert out.shape == (N, C, D, H, W)
    max_err = float(jnp.max(jnp.abs(out - ref)))
    # bf16 MXU operands (single-pass matmuls): expected error is ~1e-3 level.
    assert jnp.allclose(out, ref, atol=2e-2, rtol=2e-2), max_err
    print("KERNEL_OK")
</pallas_src>

<mosaic_0001>
module attributes {stable_mosaic.version = 11 : i64} {
  func.func @_rb_kernel(%arg0: i32, %arg1: memref<16x256xf32, #tpu.memory_space<vmem>>, %arg2: memref<768x256xbf16, #tpu.memory_space<vmem>>, %arg3: memref<1x256xf32, #tpu.memory_space<vmem>>, %arg4: memref<768x256xbf16, #tpu.memory_space<vmem>>, %arg5: memref<1x256xf32, #tpu.memory_space<vmem>>, %arg6: memref<16x256xf32, #tpu.memory_space<vmem>>, %arg7: memref<16x768xf32, #tpu.memory_space<vmem>>, %arg8: memref<16x768xf32, #tpu.memory_space<vmem>>) attributes {dimension_semantics = [#tpu.dimension_semantics<parallel>], iteration_bounds = array<i64: 1>, scalar_prefetch = 0 : i64, scratch_operands = 2 : i64, tpu.core_type = #tpu.core_type<tc>, window_params = [{transform_indices = @transform_0, window_bounds = array<i64: 16, 256>}, {pipeline_mode = #tpu.pipeline_mode<synchronous>, transform_indices = @transform_1, window_bounds = array<i64: 768, 256>}, {pipeline_mode = #tpu.pipeline_mode<synchronous>, transform_indices = @transform_2, window_bounds = array<i64: 1, 256>}, {pipeline_mode = #tpu.pipeline_mode<synchronous>, transform_indices = @transform_3, window_bounds = array<i64: 768, 256>}, {pipeline_mode = #tpu.pipeline_mode<synchronous>, transform_indices = @transform_4, window_bounds = array<i64: 1, 256>}, {transform_indices = @transform_5, window_bounds = array<i64: 16, 256>}]} {
    %cst = arith.constant 0.000000e+00 : f32
    %0 = vector.broadcast %cst : f32 to vector<1x256xf32>
    %c0 = arith.constant 0 : index
    %c0_0 = arith.constant 0 : index
    %1 = vector.load %arg1[%c0, %c0_0] : memref<16x256xf32, #tpu.memory_space<vmem>>, vector<16x256xf32>
    %c0_1 = arith.constant 0 : index
    %c256 = arith.constant 256 : index
    %2 = vector.load %arg7[%c0_1, %c256] : memref<16x768xf32, #tpu.memory_space<vmem>>, vector<16x256xf32>
    tpu.vector_store %arg7[%c0_1, %c256], %1 {strides = array<i32>} : memref<16x768xf32, #tpu.memory_space<vmem>>, vector<16x256xf32>,
    %c0_2 = arith.constant 0 : index
    %c0_3 = arith.constant 0 : index
    %3 = vector.load %arg7[%c0_2, %c0_3] : memref<16x768xf32, #tpu.memory_space<vmem>>, vector<1x256xf32>
    tpu.vector_store %arg7[%c0_2, %c0_3], %0 {strides = array<i32>} : memref<16x768xf32, #tpu.memory_space<vmem>>, vector<1x256xf32>,
    %c7 = arith.constant 7 : index
    %c512 = arith.constant 512 : index
    %4 = vector.load %arg7[%c7, %c512] : memref<16x768xf32, #tpu.memory_space<vmem>>, vector<1x256xf32>
    tpu.vector_store %arg7[%c7, %c512], %0 {strides = array<i32>} : memref<16x768xf32, #tpu.memory_space<vmem>>, vector<1x256xf32>,
    %5 = vector.extract_strided_slice %1 {offsets = [0, 0], sizes = [7, 256], strides = [1, 1]} : vector<16x256xf32> to vector<7x256xf32>
    %c1 = arith.constant 1 : index
    %c0_4 = arith.constant 0 : index
    %6 = vector.load %arg7[%c1, %c0_4] : memref<16x768xf32, #tpu.memory_space<vmem>>, vector<7x256xf32>
    tpu.vector_store %arg7[%c1, %c0_4], %5 {strides = array<i32>} : memref<16x768xf32, #tpu.memory_space<vmem>>, vector<7x256xf32>,
    %7 = vector.extract_strided_slice %1 {offsets = [1, 0], sizes = [7, 256], strides = [1, 1]} : vector<16x256xf32> to vector<7x256xf32>
    %c0_5 = arith.constant 0 : index
    %c512_6 = arith.constant 512 : index
    %8 = vector.load %arg7[%c0_5, %c512_6] : memref<16x768xf32, #tpu.memory_space<vmem>>, vector<7x256xf32>
    tpu.vector_store %arg7[%c0_5, %c512_6], %7 {strides = array<i32>} : memref<16x768xf32, #tpu.memory_space<vmem>>, vector<7x256xf32>,
    %c8 = arith.constant 8 : index
    %c0_7 = arith.constant 0 : index
    %9 = vector.load %arg7[%c8, %c0_7] : memref<16x768xf32, #tpu.memory_space<vmem>>, vector<1x256xf32>
    tpu.vector_store %arg7[%c8, %c0_7], %0 {strides = array<i32>} : memref<16x768xf32, #tpu.memory_space<vmem>>, vector<1x256xf32>,
    %c15 = arith.constant 15 : index
    %c512_8 = arith.constant 512 : index
    %10 = vector.load %arg7[%c15, %c512_8] : memref<16x768xf32, #tpu.memory_space<vmem>>, vector<1x256xf32>
    tpu.vector_store %arg7[%c15, %c512_8], %0 {strides = array<i32>} : memref<16x768xf32, #tpu.memory_space<vmem>>, vector<1x256xf32>,
    %11 = vector.extract_strided_slice %1 {offsets = [8, 0], sizes = [7, 256], strides = [1, 1]} : vector<16x256xf32> to vector<7x256xf32>
    %c9 = arith.constant 9 : index
    %c0_9 = arith.constant 0 : index
    %12 = vector.load %arg7[%c9, %c0_9] : memref<16x768xf32, #tpu.memory_space<vmem>>, vector<7x256xf32>
    tpu.vector_store %arg7[%c9, %c0_9], %11 {strides = array<i32>} : memref<16x768xf32, #tpu.memory_space<vmem>>, vector<7x256xf32>,
    %13 = vector.extract_strided_slice %1 {offsets = [9, 0], sizes = [7, 256], strides = [1, 1]} : vector<16x256xf32> to vector<7x256xf32>
    %c8_10 = arith.constant 8 : index
    %c512_11 = arith.constant 512 : index
    %14 = vector.load %arg7[%c8_10, %c512_11] : memref<16x768xf32, #tpu.memory_space<vmem>>, vector<7x256xf32>
    tpu.vector_store %arg7[%c8_10, %c512_11], %13 {strides = array<i32>} : memref<16x768xf32, #tpu.memory_space<vmem>>, vector<7x256xf32>,
    %c0_12 = arith.constant 0 : index
    %c0_13 = arith.constant 0 : index
    %15 = vector.load %arg7[%c0_12, %c0_13] : memref<16x768xf32, #tpu.memory_space<vmem>>, vector<16x768xf32>
    %16 = arith.truncf %15 : vector<16x768xf32> to vector<16x768xbf16>
    %c0_14 = arith.constant 0 : index
    %c0_15 = arith.constant 0 : index
    %17 = vector.load %arg2[%c0_14, %c0_15] : memref<768x256xbf16, #tpu.memory_space<vmem>>, vector<768x256xbf16>
    %cst_16 = arith.constant dense<0.000000e+00> : vector<16x256xf32>
    %18 = tpu.matmul %16, %17, %cst_16 {dimension_numbers = #tpu.dot_dimension_numbers<[1], [0], [0], [1], [0, 0, 1, 1], [], []>} : vector<16x768xbf16>, vector<768x256xbf16>, vector<16x256xf32> -> vector<16x256xf32>
    %c0_17 = arith.constant 0 : index
    %c0_18 = arith.constant 0 : index
    %19 = vector.load %arg3[%c0_17, %c0_18] : memref<1x256xf32, #tpu.memory_space<vmem>>, vector<1x256xf32>
    %20 = vector.broadcast %19 : vector<1x256xf32> to vector<16x256xf32>
    %21 = arith.addf %18, %20 : vector<16x256xf32>
    %cst_19 = arith.constant 0.000000e+00 : f32
    %22 = vector.broadcast %cst_19 : f32 to vector<16x256xf32>
    %23 = arith.maximumf %21, %22 : vector<16x256xf32>
    %c0_20 = arith.constant 0 : index
    %c256_21 = arith.constant 256 : index
    %24 = vector.load %arg8[%c0_20, %c256_21] : memref<16x768xf32, #tpu.memory_space<vmem>>, vector<16x256xf32>
    tpu.vector_store %arg8[%c0_20, %c256_21], %23 {strides = array<i32>} : memref<16x768xf32, #tpu.memory_space<vmem>>, vector<16x256xf32>,
    %c0_22 = arith.constant 0 : index
    %c0_23 = arith.constant 0 : index
    %25 = vector.load %arg8[%c0_22, %c0_23] : memref<16x768xf32, #tpu.memory_space<vmem>>, vector<1x256xf32>
    tpu.vector_store %arg8[%c0_22, %c0_23], %0 {strides = array<i32>} : memref<16x768xf32, #tpu.memory_space<vmem>>, vector<1x256xf32>,
    %c7_24 = arith.constant 7 : index
    %c512_25 = arith.constant 512 : index
    %26 = vector.load %arg8[%c7_24, %c512_25] : memref<16x768xf32, #tpu.memory_space<vmem>>, vector<1x256xf32>
    tpu.vector_store %arg8[%c7_24, %c512_25], %0 {strides = array<i32>} : memref<16x768xf32, #tpu.memory_space<vmem>>, vector<1x256xf32>,
    %27 = vector.extract_strided_slice %23 {offsets = [0, 0], sizes = [7, 256], strides = [1, 1]} : vector<16x256xf32> to vector<7x256xf32>
    %c1_26 = arith.constant 1 : index
    %c0_27 = arith.constant 0 : index
    %28 = vector.load %arg8[%c1_26, %c0_27] : memref<16x768xf32, #tpu.memory_space<vmem>>, vector<7x256xf32>
    tpu.vector_store %arg8[%c1_26, %c0_27], %27 {strides = array<i32>} : memref<16x768xf32, #tpu.memory_space<vmem>>, vector<7x256xf32>,
    %29 = vector.extract_strided_slice %23 {offsets = [1, 0], sizes = [7, 256], strides = [1, 1]} : vector<16x256xf32> to vector<7x256xf32>
    %c0_28 = arith.constant 0 : index
    %c512_29 = arith.constant 512 : index
    %30 = vector.load %arg8[%c0_28, %c512_29] : memref<16x768xf32, #tpu.memory_space<vmem>>, vector<7x256xf32>
    tpu.vector_store %arg8[%c0_28, %c512_29], %29 {strides = array<i32>} : memref<16x768xf32, #tpu.memory_space<vmem>>, vector<7x256xf32>,
    %c8_30 = arith.constant 8 : index
    %c0_31 = arith.constant 0 : index
    %31 = vector.load %arg8[%c8_30, %c0_31] : memref<16x768xf32, #tpu.memory_space<vmem>>, vector<1x256xf32>
    tpu.vector_store %arg8[%c8_30, %c0_31], %0 {strides = array<i32>} : memref<16x768xf32, #tpu.memory_space<vmem>>, vector<1x256xf32>,
    %c15_32 = arith.constant 15 : index
    %c512_33 = arith.constant 512 : index
    %32 = vector.load %arg8[%c15_32, %c512_33] : memref<16x768xf32, #tpu.memory_space<vmem>>, vector<1x256xf32>
    tpu.vector_store %arg8[%c15_32, %c512_33], %0 {strides = array<i32>} : memref<16x768xf32, #tpu.memory_space<vmem>>, vector<1x256xf32>,
    %33 = vector.extract_strided_slice %23 {offsets = [8, 0], sizes = [7, 256], strides = [1, 1]} : vector<16x256xf32> to vector<7x256xf32>
    %c9_34 = arith.constant 9 : index
    %c0_35 = arith.constant 0 : index
    %34 = vector.load %arg8[%c9_34, %c0_35] : memref<16x768xf32, #tpu.memory_space<vmem>>, vector<7x256xf32>
    tpu.vector_store %arg8[%c9_34, %c0_35], %33 {strides = array<i32>} : memref<16x768xf32, #tpu.memory_space<vmem>>, vector<7x256xf32>,
    %35 = vector.extract_strided_slice %23 {offsets = [9, 0], sizes = [7, 256], strides = [1, 1]} : vector<16x256xf32> to vector<7x256xf32>
    %c8_36 = arith.constant 8 : index
    %c512_37 = arith.constant 512 : index
    %36 = vector.load %arg8[%c8_36, %c512_37] : memref<16x768xf32, #tpu.memory_space<vmem>>, vector<7x256xf32>
    tpu.vector_store %arg8[%c8_36, %c512_37], %35 {strides = array<i32>} : memref<16x768xf32, #tpu.memory_space<vmem>>, vector<7x256xf32>,
    %c0_38 = arith.constant 0 : index
    %c0_39 = arith.constant 0 : index
    %37 = vector.load %arg8[%c0_38, %c0_39] : memref<16x768xf32, #tpu.memory_space<vmem>>, vector<16x768xf32>
    %38 = arith.truncf %37 : vector<16x768xf32> to vector<16x768xbf16>
    %c0_40 = arith.constant 0 : index
    %c0_41 = arith.constant 0 : index
    %39 = vector.load %arg4[%c0_40, %c0_41] : memref<768x256xbf16, #tpu.memory_space<vmem>>, vector<768x256xbf16>
    %cst_42 = arith.constant dense<0.000000e+00> : vector<16x256xf32>
    %40 = tpu.matmul %38, %39, %cst_42 {dimension_numbers = #tpu.dot_dimension_numbers<[1], [0], [0], [1], [0, 0, 1, 1], [], []>} : vector<16x768xbf16>, vector<768x256xbf16>, vector<16x256xf32> -> vector<16x256xf32>
    %c0_43 = arith.constant 0 : index
    %c0_44 = arith.constant 0 : index
    %41 = vector.load %arg5[%c0_43, %c0_44] : memref<1x256xf32, #tpu.memory_space<vmem>>, vector<1x256xf32>
    %42 = vector.broadcast %41 : vector<1x256xf32> to vector<16x256xf32>
    %43 = arith.addf %40, %42 : vector<16x256xf32>
    %44 = arith.addf %43, %1 : vector<16x256xf32>
    %cst_45 = arith.constant 0.000000e+00 : f32
    %45 = vector.broadcast %cst_45 : f32 to vector<16x256xf32>
    %46 = arith.maximumf %44, %45 : vector<16x256xf32>
    %c0_46 = arith.constant 0 : index
    %c0_47 = arith.constant 0 : index
    %47 = vector.load %arg6[%c0_46, %c0_47] : memref<16x256xf32, #tpu.memory_space<vmem>>, vector<16x256xf32>
    tpu.vector_store %arg6[%c0_46, %c0_47], %46 {strides = array<i32>} : memref<16x256xf32, #tpu.memory_space<vmem>>, vector<16x256xf32>,
    return
  }
  func.func @transform_0(%arg0: i32) -> (i32, i32) {
    %c0_i32 = arith.constant 0 : i32
    %c0_i32_0 = arith.constant 0 : i32
    return %arg0, %c0_i32 : i32, i32
  }
  func.func @transform_1(%arg0: i32) -> (i32, i32) {
    %c0_i32 = arith.constant 0 : i32
    %c0_i32_0 = arith.constant 0 : i32
    %c0_i32_1 = arith.constant 0 : i32
    return %c0_i32, %c0_i32_0 : i32, i32
  }
  func.func @transform_2(%arg0: i32) -> (i32, i32) {
    %c0_i32 = arith.constant 0 : i32
    %c0_i32_0 = arith.constant 0 : i32
    %c0_i32_1 = arith.constant 0 : i32
    return %c0_i32, %c0_i32_0 : i32, i32
  }
  func.func @transform_3(%arg0: i32) -> (i32, i32) {
    %c0_i32 = arith.constant 0 : i32
    %c0_i32_0 = arith.constant 0 : i32
    %c0_i32_1 = arith.constant 0 : i32
    return %c0_i32, %c0_i32_0 : i32, i32
  }
  func.func @transform_4(%arg0: i32) -> (i32, i32) {
    %c0_i32 = arith.constant 0 : i32
    %c0_i32_0 = arith.constant 0 : i32
    %c0_i32_1 = arith.constant 0 : i32
    return %c0_i32, %c0_i32_0 : i32, i32
  }
  func.func @transform_5(%arg0: i32) -> (i32, i32) {
    %c0_i32 = arith.constant 0 : i32
    %c0_i32_0 = arith.constant 0 : i32
    return %arg0, %c0_i32 : i32, i32
  }
}

</mosaic_0001>

<bundles_post_ra>
// kernel: rb_forward.1
= control target key start
LH: loop header
LB: loop body
LE: loop exit
PB: predicated region body
PF: predicated region fallthrough
CT: control target
= control target key end

     0   :  { %v28_v0 = vlaneseq  ;;  %v2088_v5 = vmov 0.0   ;;  %s2754_s1 = inlined_call_operand.vmem [shape: bf16[768,256], index: 1, kind: input, shape index: {}]   ;;  %s2755_s0 = inlined_call_operand.vmem [shape: f32[16,256], index: 0, kind: input, shape index: {}]   ;;  %s2756_s3 = inlined_call_operand.vmem [shape: bf16[768,256], index: 3, kind: input, shape index: {}]   ;;  %s2757_s2 = inlined_call_operand.vmem [shape: f32[1,256], index: 2, kind: input, shape index: {}]   ;;  %s2758_s4 = inlined_call_operand.vmem [shape: f32[1,256], index: 4, kind: input, shape index: {}]   ;;  %s2759_s5 = inlined_call_operand.vmem [shape: f32[16,256], index: 5, kind: output, shape index: {}]  }
   0x1   :  { %v1797_v1 = vld [vmem:[%s2754_s1 + $0x74] ss:$8 sps:$4 sm:$0xff]   ;;  %v1799_v2 = vld [vmem:[%s2754_s1 + $0x70] ss:$8 sps:$4 sm:$0xff]   ;;  %v1803_v6 = vld [vmem:[%s2754_s1 + $0x64] ss:$8 sps:$4 sm:$0xff]  }
   0x2   :  { %vm30_vm0 = vcmp.lt.s32.totalorder %v28_v0, 256  ;;  %677 = vmatprep.subr.bf16.mxu0 %v1797_v1  ;;  %v1800_v3 = vld [vmem:[%s2754_s1 + $0x174] ss:$8 sps:$4 sm:$0xff]   ;;  %v1802_v4 = vld [vmem:[%s2754_s1 + $0x170] ss:$8 sps:$4 sm:$0xff]   ;;  %v21_v49 = vld [vmem:[%s2755_s0 + $0x8] sm:$0xff] }
   0x3   :  { %32 = vst.msk [vmem:[#allocation2] ss:$8 sm:$0x3] %vm30_vm0, %v2088_v5  ;;  %52 = vst.msk [vmem:[#allocation2 + $0x30] ss:$8 sm:$0x3] %vm30_vm0, %v2088_v5  ;;  %678 = vmatpush1.bf16.msra.mxu0 %v1799_v2  ;;  %720 = vmatprep.subr.bf16.mxu1 %v1800_v3 }
   0x4   :  { %35 = vst.msk [vmem:[#allocation2 + $0x27] ss:$8 sm:$0x3] %vm30_vm0, %v2088_v5  ;;  %55 = vst.msk [vmem:[#allocation2 + $0x57] ss:$8 sm:$0x3] %vm30_vm0, %v2088_v5  ;;  %721 = vmatpush1.bf16.msra.mxu1 %v1802_v4  ;;  %679 = vmatprep.subr.bf16.mxu0 %v1803_v6 }
   0x5   :  { %814 = vst.msk [vmem:[#allocation3] ss:$8 sm:$0x3] %vm30_vm0, %v2088_v5  ;;  %817 = vst.msk [vmem:[#allocation3 + $0x27] ss:$8 sm:$0x3] %vm30_vm0, %v2088_v5 }
   0x6   :  { %834 = vst.msk [vmem:[#allocation3 + $0x30] ss:$8 sm:$0x3] %vm30_vm0, %v2088_v5  ;;  %837 = vst.msk [vmem:[#allocation3 + $0x57] ss:$8 sm:$0x3] %vm30_vm0, %v2088_v5 }
   0x7   :  { %v1805_v7 = vld [vmem:[%s2754_s1 + $0x60] ss:$8 sps:$4 sm:$0xff]   ;;  %v1806_v8 = vld [vmem:[%s2754_s1 + $0x164] ss:$8 sps:$4 sm:$0xff]   ;;  %v1809_v10 = vld [vmem:[%s2754_s1 + $0x54] ss:$8 sps:$4 sm:$0xff]  }
   0x8   :  { %v1808_v9 = vld [vmem:[%s2754_s1 + $0x160] ss:$8 sps:$4 sm:$0xff]   ;;  %722 = vmatprep.subr.bf16.mxu1 %v1806_v8  ;;  %680 = vmatpush1.bf16.msra.mxu0 %v1805_v7  ;;  %v1811_v11 = vld [vmem:[%s2754_s1 + $0x50] ss:$8 sps:$4 sm:$0xff]   ;;  %v1812_v12 = vld [vmem:[%s2754_s1 + $0x154] ss:$8 sps:$4 sm:$0xff]  }
   0x9   :  { %681 = vmatprep.subr.bf16.mxu0 %v1809_v10  ;;  %v1815_v13 = vld [vmem:[%s2754_s1 + $0x44] ss:$8 sps:$4 sm:$0xff]   ;;  %723 = vmatpush1.bf16.msra.mxu1 %v1808_v9  ;;  %v1814_v14 = vld [vmem:[%s2754_s1 + $0x150] ss:$8 sps:$4 sm:$0xff]   ;;  %v1817_v16 = vld [vmem:[%s2754_s1 + $0x40] ss:$8 sps:$4 sm:$0xff]  }
   0xa   :  { %724 = vmatprep.subr.bf16.mxu1 %v1812_v12  ;;  %v1818_v15 = vld [vmem:[%s2754_s1 + $0x144] ss:$8 sps:$4 sm:$0xff]   ;;  %v1821_v17 = vld [vmem:[%s2754_s1 + $0x34] ss:$8 sps:$4 sm:$0xff]   ;;  %v1820_v18 = vld [vmem:[%s2754_s1 + $0x140] ss:$8 sps:$4 sm:$0xff]  }
   0xb   :  { %v1824_v19 = vld [vmem:[%s2754_s1 + $0x134] ss:$8 sps:$4 sm:$0xff]   ;;  %v1823_v20 = vld [vmem:[%s2754_s1 + $0x30] ss:$8 sps:$4 sm:$0xff]   ;;  %v1827_v21 = vld [vmem:[%s2754_s1 + $0x24] ss:$8 sps:$4 sm:$0xff]  }
   0xc   :  { %682 = vmatpush1.bf16.msra.mxu0 %v1811_v11  ;;  %v1826_v22 = vld [vmem:[%s2754_s1 + $0x130] ss:$8 sps:$4 sm:$0xff]   ;;  %v1830_v23 = vld [vmem:[%s2754_s1 + $0x124] ss:$8 sps:$4 sm:$0xff]   ;;  %v1829_v24 = vld [vmem:[%s2754_s1 + $0x20] ss:$8 sps:$4 sm:$0xff]  }
   0xd   :  { %683 = vmatprep.subr.bf16.mxu0 %v1815_v13  ;;  %725 = vmatpush1.bf16.msra.mxu1 %v1814_v14  ;;  %v1833_v25 = vld [vmem:[%s2754_s1 + $0x14] ss:$8 sps:$4 sm:$0xff]   ;;  %v1832_v26 = vld [vmem:[%s2754_s1 + $0x120] ss:$8 sps:$4 sm:$0xff]   ;;  %v1835_v28 = vld [vmem:[%s2754_s1 + $0x10] ss:$8 sps:$4 sm:$0xff]  }
   0xe   :  { %726 = vmatprep.subr.bf16.mxu1 %v1818_v15  ;;  %v1836_v27 = vld [vmem:[%s2754_s1 + $0x114] ss:$8 sps:$4 sm:$0xff]   ;;  %v1839_v29 = vld [vmem:[%s2754_s1 + $0x4] ss:$8 sps:$4 sm:$0xff]   ;;  %v1838_v30 = vld [vmem:[%s2754_s1 + $0x110] ss:$8 sps:$4 sm:$0xff]  }
   0xf   :  { %v1842_v31 = vld [vmem:[%s2754_s1 + $0x104] ss:$8 sps:$4 sm:$0xff]   ;;  %v1841_v32 = vld [vmem:[%s2754_s1] ss:$8 sps:$4 sm:$0xff]   ;;  %v1845_v33 = vld [vmem:[%s2754_s1 + $0xf4] ss:$8 sps:$4 sm:$0xff]  }
  0x10   :  { %684 = vmatpush1.bf16.msra.mxu0 %v1817_v16  ;;  %v1844_v34 = vld [vmem:[%s2754_s1 + $0x100] ss:$8 sps:$4 sm:$0xff]   ;;  %v1848_v35 = vld [vmem:[%s2754_s1 + $0x1f4] ss:$8 sps:$4 sm:$0xff]   ;;  %v1847_v36 = vld [vmem:[%s2754_s1 + $0xf0] ss:$8 sps:$4 sm:$0xff]  }
  0x11   :  { %685 = vmatprep.subr.bf16.mxu0 %v1821_v17  ;;  %727 = vmatpush1.bf16.msra.mxu1 %v1820_v18  ;;  %v1851_v37 = vld [vmem:[%s2754_s1 + $0xe4] ss:$8 sps:$4 sm:$0xff]   ;;  %v1850_v38 = vld [vmem:[%s2754_s1 + $0x1f0] ss:$8 sps:$4 sm:$0xff]   ;;  %v1853_v40 = vld [vmem:[%s2754_s1 + $0xe0] ss:$8 sps:$4 sm:$0xff]  }
  0x12   :  { %728 = vmatprep.subr.bf16.mxu1 %v1824_v19  ;;  %v1854_v39 = vld [vmem:[%s2754_s1 + $0x1e4] ss:$8 sps:$4 sm:$0xff]   ;;  %v1857_v41 = vld [vmem:[%s2754_s1 + $0xd4] ss:$8 sps:$4 sm:$0xff]   ;;  %v1856_v42 = vld [vmem:[%s2754_s1 + $0x1e0] ss:$8 sps:$4 sm:$0xff]  }
  0x13   :  { %v1860_v43 = vld [vmem:[%s2754_s1 + $0x1d4] ss:$8 sps:$4 sm:$0xff]   ;;  %v1859_v44 = vld [vmem:[%s2754_s1 + $0xd0] ss:$8 sps:$4 sm:$0xff]   ;;  %v1863_v45 = vld [vmem:[%s2754_s1 + $0xc4] ss:$8 sps:$4 sm:$0xff]  }
  0x14   :  { %686 = vmatpush1.bf16.msra.mxu0 %v1823_v20  ;;  %v1862_v46 = vld [vmem:[%s2754_s1 + $0x1d0] ss:$8 sps:$4 sm:$0xff]   ;;  %v1865_v47 = vld [vmem:[%s2754_s1 + $0xc0] ss:$8 sps:$4 sm:$0xff]   ;;  %v1866_v48 = vld [vmem:[%s2754_s1 + $0x1c4] ss:$8 sps:$4 sm:$0xff]  }
  0x15   :  { %687 = vmatprep.subr.bf16.mxu0 %v1827_v21  ;;  %729 = vmatpush1.bf16.msra.mxu1 %v1826_v22  ;;  %v23_v50 = vld [vmem:[%s2755_s0 + $0x18] sm:$0xff]  ;;  %v40_v51 = vrot.slane %v21_v49, 7  ;;  %25 = vst [vmem:[#allocation2 + $0x18] sm:$0xff] %v21_v49  ;;  %v2270_v53 = vld [vmem:[%s2755_s0] sm:$0xff]  ;;  %v2275_v54 = vld [vmem:[%s2755_s0 + $0x10] sm:$0xff]  ;;  %v46_v56 = vrot.slane %v21_v49, 1 }
  0x16   :  { %730 = vmatprep.subr.bf16.mxu1 %v1830_v23  ;;  %v60_v52 = vrot.slane %v23_v50, 7  ;;  %27 = vst [vmem:[#allocation2 + $0x48] sm:$0xff] %v23_v50  ;;  %v86_v55 = vpack.c.bf16 %v23_v50, %v21_v49  ;;  %v1869_v57 = vld [vmem:[%s2754_s1 + $0xb4] ss:$8 sps:$4 sm:$0xff]   ;;  %v39_v58 = vrot.slane %v2270_v53, 7  ;;  %v59_v59 = vrot.slane %v2275_v54, 7 }
  0x17   :  { %24 = vst [vmem:[#allocation2 + $0x10] sm:$0xff] %v2270_v53  ;;  %26 = vst [vmem:[#allocation2 + $0x40] sm:$0xff] %v2275_v54  ;;  %v1868_v60 = vld [vmem:[%s2754_s1 + $0x1c0] ss:$8 sps:$4 sm:$0xff]   ;;  %v66_v61 = vrot.slane %v23_v50, 1  ;;  %v45_v63 = vrot.slane %v2270_v53, 1 }
  0x18   :  { %688 = vmatpush1.bf16.msra.mxu0 %v1829_v24  ;;  %44 = vst [vmem:[#allocation2 + $0x8] sm:$0xfe] %v40_v51  ;;  %64 = vst [vmem:[#allocation2 + $0x38] sm:$0xfe] %v60_v52  ;;  %752 = vmatprep.mubr.bf16.mxu1 %v86_v55  ;;  %v1872_v62 = vld [vmem:[%s2754_s1 + $0x1b4] ss:$8 sps:$4 sm:$0xff]  }
  0x19   :  { %689 = vmatprep.subr.bf16.mxu0 %v1833_v25  ;;  %731 = vmatpush1.bf16.msra.mxu1 %v1832_v26  ;;  %50 = vst [vmem:[#allocation2 + $0x28] sm:$0x7f] %v46_v56  ;;  %43 = vst [vmem:[#allocation2] sm:$0xfe] %v39_v58  ;;  %v65_v1 = vrot.slane %v2275_v54, 1  ;;  %v137_v16 = vld [vmem:[%s2754_s1 + $0x180] sm:$0xff]  ;;  %v85_v26 = vpack.c.bf16 %v2275_v54, %v2270_v53 }
  0x1a   :  { %732 = vmatprep.subr.bf16.mxu1 %v1836_v27  ;;  %63 = vst [vmem:[#allocation2 + $0x30] sm:$0xfe] %v59_v59  ;;  %v1871_v2 = vld [vmem:[%s2754_s1 + $0xb0] ss:$8 sps:$4 sm:$0xff]   ;;  %70 = vst [vmem:[#allocation2 + $0x58] sm:$0x7f] %v66_v61 }
  0x1b   :  { %v1875_v3 = vld [vmem:[%s2754_s1 + $0xa4] ss:$8 sps:$4 sm:$0xff]   ;;  %49 = vst [vmem:[#allocation2 + $0x20] sm:$0x7f] %v45_v63  ;;  %69 = vst [vmem:[#allocation2 + $0x50] sm:$0x7f] %v65_v1 }
  0x1c   :  { %690 = vmatpush1.bf16.msra.mxu0 %v1835_v28  ;;  %v1874_v4 = vld [vmem:[%s2754_s1 + $0x1b0] ss:$8 sps:$4 sm:$0xff]   ;;  %v1878_v5 = vld [vmem:[%s2754_s1 + $0x1a4] ss:$8 sps:$4 sm:$0xff]   ;;  %v1877_v6 = vld [vmem:[%s2754_s1 + $0xa0] ss:$8 sps:$4 sm:$0xff]  }
  0x1d   :  { %691 = vmatprep.subr.bf16.mxu0 %v1839_v29  ;;  %733 = vmatpush1.bf16.msra.mxu1 %v1838_v30  ;;  %v1881_v7 = vld [vmem:[%s2754_s1 + $0x94] ss:$8 sps:$4 sm:$0xff]   ;;  %v1880_v10 = vld [vmem:[%s2754_s1 + $0x1a0] ss:$8 sps:$4 sm:$0xff]   ;;  %v1883_v13 = vld [vmem:[%s2754_s1 + $0x90] ss:$8 sps:$4 sm:$0xff]  }
  0x1e   :  { %734 = vmatprep.subr.bf16.mxu1 %v1842_v31  ;;  %v1884_v12 = vld [vmem:[%s2754_s1 + $0x194] ss:$8 sps:$4 sm:$0xff]   ;;  %v1886_v14 = vld [vmem:[%s2754_s1 + $0x190] ss:$8 sps:$4 sm:$0xff]   ;;  %v1887_v15 = vld [vmem:[%s2754_s1 + $0x84] ss:$8 sps:$4 sm:$0xff]  }
  0x1f   :  { %v72_v8 = vld [vmem:[#allocation2 + $0x8] sm:$0xff]  ;;  %v78_v9 = vld [vmem:[#allocation2 + $0x38] sm:$0xff] }
  0x20   :  { %692 = vmatpush1.bf16.msra.mxu0 %v1841_v32  ;;  %v84_v11 = vpack.c.bf16 %v78_v9, %v72_v8  ;;  %v1889_v17 = vld [vmem:[%s2754_s1 + $0x80] ss:$8 sps:$4 sm:$0xff]   ;;  %v1890_v19 = vld [vmem:[%s2754_s1 + $0x184] ss:$8 sps:$4 sm:$0xff]   ;;  %v1894_v22 = vld [vmem:[%s2754_s1 + $0x274] ss:$8 sps:$4 sm:$0xff]  }
  0x21   :  { %693 = vmatprep.subr.bf16.mxu0 %v1845_v33  ;;  %735 = vmatpush1.bf16.msra.mxu1 %v1844_v34  ;;  %v138_v18 = vld [vmem:[%s2754_s1 + $0x188] sm:$0xff]  ;;  %v71_v20 = vld [vmem:[#allocation2] sm:$0xff]  ;;  %v77_v21 = vld [vmem:[#allocation2 + $0x30] sm:$0xff] }
  0x22   :  { %736 = vmatprep.subr.bf16.mxu1 %v1848_v35  ;;  %709 = vmatprep.mubr.bf16.mxu0 %v84_v11  ;;  %v1652_v23 = vcombine.low %v137_v16, %v138_v18  ;;  %v83_v24 = vpack.c.bf16 %v77_v21, %v71_v20  ;;  %v1892_v25 = vld [vmem:[%s2754_s1 + $0x270] ss:$8 sps:$4 sm:$0xff]   ;;  %v1897_v27 = vld [vmem:[%s2754_s1 + $0x264] ss:$8 sps:$4 sm:$0xff]   ;;  %v1895_v30 = vld [vmem:[%s2754_s1 + $0x260] ss:$8 sps:$4 sm:$0xff]  }
  0x23   :  { %v76_v28 = vld [vmem:[#allocation2 + $0x28] sm:$0xff]  ;;  %v82_v29 = vld [vmem:[#allocation2 + $0x58] sm:$0xff]  ;;  %v81_v61 = vld [vmem:[#allocation2 + $0x50] sm:$0xff] }
  0x24   :  { %694 = vmatpush2.bf16.msra.mxu0 %v1847_v36  ;;  %v88_v31 = vpack.c.bf16 %v82_v29, %v76_v28  ;;  %v1900_v32 = vld [vmem:[%s2754_s1 + $0x254] ss:$8 sps:$4 sm:$0xff]   ;;  %v1898_v33 = vld [vmem:[%s2754_s1 + $0x250] ss:$8 sps:$4 sm:$0xff]   ;;  %v1903_v34 = vld [vmem:[%s2754_s1 + $0x244] ss:$8 sps:$4 sm:$0xff]  }
  0x25   :  { %695 = vmatprep.subr.bf16.mxu0 %v1851_v37  ;;  %737 = vmatpush2.bf16.msra.mxu1 %v1850_v38  ;;  %v1901_v35 = vld [vmem:[%s2754_s1 + $0x240] ss:$8 sps:$4 sm:$0xff]   ;;  %v1906_v36 = vld [vmem:[%s2754_s1 + $0x234] ss:$8 sps:$4 sm:$0xff]   ;;  %v1904_v37 = vld [vmem:[%s2754_s1 + $0x230] ss:$8 sps:$4 sm:$0xff]  }
  0x26   :  { %738 = vmatprep.subr.bf16.mxu1 %v1854_v39  ;;  %v1909_v38 = vld [vmem:[%s2754_s1 + $0x224] ss:$8 sps:$4 sm:$0xff]   ;;  %v1907_v39 = vld [vmem:[%s2754_s1 + $0x220] ss:$8 sps:$4 sm:$0xff]   ;;  %v1922_v49 = vld [vmem:[%s2754_s1 + $0x2d0] ss:$8 sps:$4 sm:$0xff]  }
  0x27   :  { %v1927_v50 = vld [vmem:[%s2754_s1 + $0x2c4] ss:$8 sps:$4 sm:$0xff]   ;;  %v1925_v51 = vld [vmem:[%s2754_s1 + $0x2c0] ss:$8 sps:$4 sm:$0xff]   ;;  %v1930_v52 = vld [vmem:[%s2754_s1 + $0x2b4] ss:$8 sps:$4 sm:$0xff]  }
  0x28   :  { %696 = vmatpush2.bf16.msra.mxu0 %v1853_v40  ;;  %v1912_v40 = vld [vmem:[%s2754_s1 + $0x214] ss:$8 sps:$4 sm:$0xff]   ;;  %v1928_v53 = vld [vmem:[%s2754_s1 + $0x2b0] ss:$8 sps:$4 sm:$0xff]   ;;  %v1933_v54 = vld [vmem:[%s2754_s1 + $0x2a4] ss:$8 sps:$4 sm:$0xff]  }
  0x29   :  { %697 = vmatprep.subr.bf16.mxu0 %v1857_v41  ;;  %739 = vmatpush2.bf16.msra.mxu1 %v1856_v42  ;;  %v1910_v41 = vld [vmem:[%s2754_s1 + $0x210] ss:$8 sps:$4 sm:$0xff]   ;;  %v1915_v42 = vld [vmem:[%s2754_s1 + $0x204] ss:$8 sps:$4 sm:$0xff]   ;;  %v1931_v55 = vld [vmem:[%s2754_s1 + $0x2a0] ss:$8 sps:$4 sm:$0xff]  }
  0x2a   :  { %740 = vmatprep.subr.bf16.mxu1 %v1860_v43  ;;  %v1913_v43 = vld [vmem:[%s2754_s1 + $0x200] ss:$8 sps:$4 sm:$0xff]   ;;  %v1936_v56 = vld [vmem:[%s2754_s1 + $0x294] ss:$8 sps:$4 sm:$0xff]   ;;  %v1939_v58 = vld [vmem:[%s2754_s1 + $0x284] ss:$8 sps:$4 sm:$0xff]  }
  0x2b   :  { %v1937_v59 = vld [vmem:[%s2754_s1 + $0x280] ss:$8 sps:$4 sm:$0xff]   ;;  %v1940_v63 = vld [vmem:[%s2756_s3 + $0x170] ss:$8 sps:$4 sm:$0xff]   ;;  %v1942_v1 = vld [vmem:[%s2756_s3 + $0x174] ss:$8 sps:$4 sm:$0xff]  }
  0x2c   :  { %698 = vmatpush2.bf16.msra.mxu0 %v1859_v44  ;;  %v1918_v44 = vld [vmem:[%s2754_s1 + $0x2f4] ss:$8 sps:$4 sm:$0xff]   ;;  %v1952_v9 = vld [vmem:[%s2756_s3 + $0x150] ss:$8 sps:$4 sm:$0xff]   ;;  %v1972_v20 = vld [vmem:[%s2756_s3 + $0x124] ss:$8 sps:$4 sm:$0xff]  }
  0x2d   :  { %699 = vmatprep.subr.bf16.mxu0 %v1863_v45  ;;  %741 = vmatpush2.bf16.msra.mxu1 %v1862_v46  ;;  %v1916_v45 = vld [vmem:[%s2754_s1 + $0x2f0] ss:$8 sps:$4 sm:$0xff]   ;;  %v1921_v46 = vld [vmem:[%s2754_s1 + $0x2e4] ss:$8 sps:$4 sm:$0xff]   ;;  %v1954_v8 = vld [vmem:[%s2756_s3 + $0x154] ss:$8 sps:$4 sm:$0xff]  }
  0x2e   :  { %742 = vmatprep.subr.bf16.mxu1 %v1866_v48  ;;  %v1924_v48 = vld [vmem:[%s2754_s1 + $0x2d4] ss:$8 sps:$4 sm:$0xff]   ;;  %v1955_v11 = vld [vmem:[%s2756_s3 + $0x50] ss:$8 sps:$4 sm:$0xff]   ;;  %v1975_v21 = vld [vmem:[%s2756_s3 + $0x24] ss:$8 sps:$4 sm:$0xff]  }
  0x2f   :  { %v1966_v16 = vld [vmem:[%s2756_s3 + $0x134] ss:$8 sps:$4 sm:$0xff]   ;;  %v1964_v18 = vld [vmem:[%s2756_s3 + $0x130] ss:$8 sps:$4 sm:$0xff]   ;;  %v1984_v28 = vld [vmem:[%s2756_s3 + $0x104] ss:$8 sps:$4 sm:$0xff]  }
  0x30   :  { %700 = vmatpush2.bf16.msra.mxu0 %v1865_v47  ;;  %v1919_v47 = vld [vmem:[%s2754_s1 + $0x2e0] ss:$8 sps:$4 sm:$0xff]   ;;  %v1987_v29 = vld [vmem:[%s2756_s3 + $0x4] ss:$8 sps:$4 sm:$0xff]  }
  0x31   :  { %701 = vmatprep.subr.bf16.mxu0 %v1869_v57  ;;  %743 = vmatpush2.bf16.msra.mxu1 %v1868_v60  ;;  %v1934_v57 = vld [vmem:[%s2754_s1 + $0x290] ss:$8 sps:$4 sm:$0xff]   ;;  %v75_v60 = vld [vmem:[#allocation2 + $0x20] sm:$0xff] }
  0x32   :  { %744 = vmatprep.subr.bf16.mxu1 %v1872_v62  ;;  %v87_v62 = vpack.c.bf16 %v81_v61, %v75_v60  ;;  %v2027_v60 = vld [vmem:[%s2756_s3 + $0x90] ss:$8 sps:$4 sm:$0xff]   ;;  %v2029_v61 = vld [vmem:[%s2756_s3 + $0x94] ss:$8 sps:$4 sm:$0xff]  }
  0x34   :  { %702 = vmatpush2.bf16.msra.mxu0 %v1871_v2  ;;  %v1943_v2 = vld [vmem:[%s2756_s3 + $0x70] ss:$8 sps:$4 sm:$0xff]  }
  0x35   :  { %703 = vmatprep.subr.bf16.mxu0 %v1875_v3  ;;  %745 = vmatpush2.bf16.msra.mxu1 %v1874_v4  ;;  %v1945_v3 = vld [vmem:[%s2756_s3 + $0x74] ss:$8 sps:$4 sm:$0xff]   ;;  %v1946_v4 = vld [vmem:[%s2756_s3 + $0x160] ss:$8 sps:$4 sm:$0xff]  }
  0x36   :  { %746 = vmatprep.subr.bf16.mxu1 %v1878_v5  ;;  %v1948_v5 = vld [vmem:[%s2756_s3 + $0x164] ss:$8 sps:$4 sm:$0xff]  }
  0x38   :  { %704 = vmatpush2.bf16.msra.mxu0 %v1877_v6  ;;  %v1949_v6 = vld [vmem:[%s2756_s3 + $0x60] ss:$8 sps:$4 sm:$0xff]  }
  0x39   :  { %705 = vmatprep.subr.bf16.mxu0 %v1881_v7  ;;  %747 = vmatpush2.bf16.msra.mxu1 %v1880_v10  ;;  %v1951_v7 = vld [vmem:[%s2756_s3 + $0x64] ss:$8 sps:$4 sm:$0xff]   ;;  %v1957_v10 = vld [vmem:[%s2756_s3 + $0x54] ss:$8 sps:$4 sm:$0xff]  }
  0x3a   :  { %748 = vmatprep.subr.bf16.mxu1 %v1884_v12  ;;  %v1960_v12 = vld [vmem:[%s2756_s3 + $0x144] ss:$8 sps:$4 sm:$0xff]  }
  0x3c   :  { %706 = vmatpush2.bf16.msra.mxu0 %v1883_v13  ;;  %v1963_v13 = vld [vmem:[%s2756_s3 + $0x44] ss:$8 sps:$4 sm:$0xff]  }
  0x3d   :  { %707 = vmatprep.subr.bf16.mxu0 %v1887_v15  ;;  %749 = vmatpush2.bf16.msra.mxu1 %v1886_v14  ;;  %v1958_v14 = vld [vmem:[%s2756_s3 + $0x140] ss:$8 sps:$4 sm:$0xff]  }
  0x3e   :  { %750 = vmatprep.subr.bf16.mxu1 %v1890_v19  ;;  %v1961_v15 = vld [vmem:[%s2756_s3 + $0x40] ss:$8 sps:$4 sm:$0xff]   ;;  %v1967_v19 = vld [vmem:[%s2756_s3 + $0x30] ss:$8 sps:$4 sm:$0xff]  }
  0x40   :  { %708 = vmatpush2.bf16.msra.mxu0 %v1889_v17  ;;  %v1969_v17 = vld [vmem:[%s2756_s3 + $0x34] ss:$8 sps:$4 sm:$0xff]  }
  0x41   :  { %763 = vmatprep.subr.bf16.mxu0 %v1894_v22  ;;  %751 = vmatpush2.bf16.msra.mxu1 %v1652_v23  ;;  %v1970_v22 = vld [vmem:[%s2756_s3 + $0x120] ss:$8 sps:$4 sm:$0xff]  }
  0x42   :  { %1459 = vmatprep.subr.bf16.mxu1 %v1945_v3  ;;  %v1973_v23 = vld [vmem:[%s2756_s3 + $0x20] ss:$8 sps:$4 sm:$0xff]  }
  0x43   :  { %710 = vmatmul.mubr.bf16.vlgmr.msra.gmra.mxu0 %v83_v24  ;;  %v1978_v24 = vld [vmem:[%s2756_s3 + $0x114] ss:$8 sps:$4 sm:$0xff]  }
  0x44   :  { %764 = vmatpush1.bf16.msra.mxu0 %v1892_v25  ;;  %753 = vmatmul.mubr.bf16.vlgmr.msra.gmra.mxu1 %v85_v26  ;;  %v1981_v25 = vld [vmem:[%s2756_s3 + $0x14] ss:$8 sps:$4 sm:$0xff]   ;;  %v1976_v26 = vld [vmem:[%s2756_s3 + $0x110] ss:$8 sps:$4 sm:$0xff]  }
  0x45   :  { %765 = vmatprep.subr.bf16.mxu0 %v1897_v27  ;;  %795 = vmatprep.mubr.bf16.mxu0 %v88_v31  ;;  %v1979_v27 = vld [vmem:[%s2756_s3 + $0x10] ss:$8 sps:$4 sm:$0xff]   ;;  %v1985_v31 = vld [vmem:[%s2756_s3] ss:$8 sps:$4 sm:$0xff]  }
  0x46   :  { %1460 = vmatpush1.bf16.msra.mxu1 %v1943_v2  ;;  %v2631_v2 = vshrl.u32 %v28_v0, 7 }
  0x47   :  { %1461 = vmatprep.subr.bf16.mxu1 %v1951_v7 }
  0x48   :  { %766 = vmatpush1.bf16.msra.mxu0 %v1895_v30  ;;  %v1982_v30 = vld [vmem:[%s2756_s3 + $0x100] ss:$8 sps:$4 sm:$0xff]  }
  0x49   :  { %767 = vmatprep.subr.bf16.mxu0 %v1900_v32  ;;  %v1990_v32 = vld [vmem:[%s2756_s3 + $0x1f4] ss:$8 sps:$4 sm:$0xff]  }
  0x4a   :  { %1462 = vmatpush1.bf16.msra.mxu1 %v1949_v6  ;;  %v193_v6 = vsub.s32 1, %v2631_v2 }
  0x4b   :  { %1463 = vmatprep.subr.bf16.mxu1 %v1957_v10 }
  0x4c   :  { %768 = vmatpush1.bf16.msra.mxu0 %v1898_v33  ;;  %v1993_v33 = vld [vmem:[%s2756_s3 + $0xf4] ss:$8 sps:$4 sm:$0xff]  }
  0x4d   :  { %769 = vmatprep.subr.bf16.mxu0 %v1903_v34  ;;  %v1988_v34 = vld [vmem:[%s2756_s3 + $0x1f0] ss:$8 sps:$4 sm:$0xff]  }
  0x4e   :  { %1464 = vmatpush1.bf16.msra.mxu1 %v1955_v11 }
  0x4f   :  { %1465 = vmatprep.subr.bf16.mxu1 %v1963_v13 }
  0x50   :  { %770 = vmatpush1.bf16.msra.mxu0 %v1901_v35  ;;  %v1991_v35 = vld [vmem:[%s2756_s3 + $0xf0] ss:$8 sps:$4 sm:$0xff]  }
  0x51   :  { %771 = vmatprep.subr.bf16.mxu0 %v1906_v36  ;;  %v1996_v36 = vld [vmem:[%s2756_s3 + $0x1e4] ss:$8 sps:$4 sm:$0xff]  }
  0x52   :  { %1466 = vmatpush1.bf16.msra.mxu1 %v1961_v15 }
  0x53   :  { %1467 = vmatprep.subr.bf16.mxu1 %v1969_v17 }
  0x54   :  { %772 = vmatpush1.bf16.msra.mxu0 %v1904_v37  ;;  %v1999_v37 = vld [vmem:[%s2756_s3 + $0xe4] ss:$8 sps:$4 sm:$0xff]  }
  0x55   :  { %773 = vmatprep.subr.bf16.mxu0 %v1909_v38  ;;  %v1994_v38 = vld [vmem:[%s2756_s3 + $0x1e0] ss:$8 sps:$4 sm:$0xff]  }
  0x56   :  { %1468 = vmatpush1.bf16.msra.mxu1 %v1967_v19 }
  0x57   :  { %1469 = vmatprep.subr.bf16.mxu1 %v1975_v21 }
  0x58   :  { %774 = vmatpush1.bf16.msra.mxu0 %v1907_v39  ;;  %v1997_v39 = vld [vmem:[%s2756_s3 + $0xe0] ss:$8 sps:$4 sm:$0xff]  }
  0x59   :  { %775 = vmatprep.subr.bf16.mxu0 %v1912_v40  ;;  %v2002_v40 = vld [vmem:[%s2756_s3 + $0x1d4] ss:$8 sps:$4 sm:$0xff]  }
  0x5a   :  { %1470 = vmatpush1.bf16.msra.mxu1 %v1973_v23 }
  0x5b   :  { %1471 = vmatprep.subr.bf16.mxu1 %v1981_v25 }
  0x5c   :  { %776 = vmatpush1.bf16.msra.mxu0 %v1910_v41  ;;  %v2005_v41 = vld [vmem:[%s2756_s3 + $0xd4] ss:$8 sps:$4 sm:$0xff]  }
  0x5d   :  { %777 = vmatprep.subr.bf16.mxu0 %v1915_v42  ;;  %v2000_v42 = vld [vmem:[%s2756_s3 + $0x1d0] ss:$8 sps:$4 sm:$0xff]  }
  0x5e   :  { %1472 = vmatpush1.bf16.msra.mxu1 %v1979_v27 }
  0x5f   :  { %1473 = vmatprep.subr.bf16.mxu1 %v1987_v29 }
  0x60   :  { %778 = vmatpush1.bf16.msra.mxu0 %v1913_v43  ;;  %v2003_v43 = vld [vmem:[%s2756_s3 + $0xd0] ss:$8 sps:$4 sm:$0xff]  }
  0x61   :  { %779 = vmatprep.subr.bf16.mxu0 %v1918_v44  ;;  %v2008_v44 = vld [vmem:[%s2756_s3 + $0x1c4] ss:$8 sps:$4 sm:$0xff]  }
  0x62   :  { %1474 = vmatpush1.bf16.msra.mxu1 %v1985_v31 }
  0x63   :  { %1475 = vmatprep.subr.bf16.mxu1 %v1993_v33 }
  0x64   :  { %780 = vmatpush2.bf16.msra.mxu0 %v1916_v45  ;;  %v2006_v45 = vld [vmem:[%s2756_s3 + $0x1c0] ss:$8 sps:$4 sm:$0xff]  }
  0x65   :  { %781 = vmatprep.subr.bf16.mxu0 %v1921_v46  ;;  %v2014_v46 = vld [vmem:[%s2756_s3 + $0x1b4] ss:$8 sps:$4 sm:$0xff]  }
  0x66   :  { %1476 = vmatpush2.bf16.msra.mxu1 %v1991_v35 }
  0x67   :  { %1477 = vmatprep.subr.bf16.mxu1 %v1999_v37 }
  0x68   :  { %782 = vmatpush2.bf16.msra.mxu0 %v1919_v47  ;;  %v2012_v47 = vld [vmem:[%s2756_s3 + $0x1b0] ss:$8 sps:$4 sm:$0xff]  }
  0x69   :  { %783 = vmatprep.subr.bf16.mxu0 %v1924_v48  ;;  %v2020_v48 = vld [vmem:[%s2756_s3 + $0x1a4] ss:$8 sps:$4 sm:$0xff]  }
  0x6a   :  { %1478 = vmatpush2.bf16.msra.mxu1 %v1997_v39 }
  0x6b   :  { %1479 = vmatprep.subr.bf16.mxu1 %v2005_v41 }
  0x6c   :  { %784 = vmatpush2.bf16.msra.mxu0 %v1922_v49  ;;  %v2011_v49 = vld [vmem:[%s2756_s3 + $0xc4] ss:$8 sps:$4 sm:$0xff]  }
  0x6d   :  { %785 = vmatprep.subr.bf16.mxu0 %v1927_v50  ;;  %v2018_v50 = vld [vmem:[%s2756_s3 + $0x1a0] ss:$8 sps:$4 sm:$0xff]  }
  0x6e   :  { %1480 = vmatpush2.bf16.msra.mxu1 %v2003_v43 }
  0x6f   :  { %1481 = vmatprep.subr.bf16.mxu1 %v2011_v49 }
  0x70   :  { %786 = vmatpush2.bf16.msra.mxu0 %v1925_v51  ;;  %v2009_v51 = vld [vmem:[%s2756_s3 + $0xc0] ss:$8 sps:$4 sm:$0xff]  }
  0x71   :  { %787 = vmatprep.subr.bf16.mxu0 %v1930_v52  ;;  %v2026_v52 = vld [vmem:[%s2756_s3 + $0x194] ss:$8 sps:$4 sm:$0xff]  }
  0x72   :  { %1482 = vmatpush2.bf16.msra.mxu1 %v2009_v51 }
  0x74   :  { %788 = vmatpush2.bf16.msra.mxu0 %v1928_v53  ;;  %v2017_v53 = vld [vmem:[%s2756_s3 + $0xb4] ss:$8 sps:$4 sm:$0xff]  }
  0x75   :  { %789 = vmatprep.subr.bf16.mxu0 %v1933_v54  ;;  %v2024_v54 = vld [vmem:[%s2756_s3 + $0x190] ss:$8 sps:$4 sm:$0xff]   ;;  %1483 = vmatprep.subr.bf16.mxu1 %v2017_v53 }
  0x78   :  { %790 = vmatpush2.bf16.msra.mxu0 %v1931_v55  ;;  %v2015_v55 = vld [vmem:[%s2756_s3 + $0xb0] ss:$8 sps:$4 sm:$0xff]  }
  0x79   :  { %791 = vmatprep.subr.bf16.mxu0 %v1936_v56  ;;  %1484 = vmatpush2.bf16.msra.mxu1 %v2015_v55  ;;  %v2032_v56 = vld [vmem:[%s2756_s3 + $0x184] ss:$8 sps:$4 sm:$0xff]  }
  0x7c   :  { %792 = vmatpush2.bf16.msra.mxu0 %v1934_v57  ;;  %v2023_v57 = vld [vmem:[%s2756_s3 + $0xa4] ss:$8 sps:$4 sm:$0xff]  }
  0x7d   :  { %793 = vmatprep.subr.bf16.mxu0 %v1939_v58  ;;  %v2030_v58 = vld [vmem:[%s2756_s3 + $0x180] ss:$8 sps:$4 sm:$0xff]   ;;  %1485 = vmatprep.subr.bf16.mxu1 %v2023_v57  ;;  %v2044_v57 = vld [vmem:[%s2756_s3 + $0x254] ss:$8 sps:$4 sm:$0xff]  }
  0x80   :  { %794 = vmatpush2.bf16.msra.mxu0 %v1937_v59  ;;  %v2021_v59 = vld [vmem:[%s2756_s3 + $0xa0] ss:$8 sps:$4 sm:$0xff]  }
  0x81   :  { %1502 = vmatprep.subr.bf16.mxu0 %v1942_v1  ;;  %1486 = vmatpush2.bf16.msra.mxu1 %v2021_v59  ;;  %v2038_v1 = vld [vmem:[%s2756_s3 + $0x274] ss:$8 sps:$4 sm:$0xff]   ;;  %v2047_v59 = vld [vmem:[%s2756_s3 + $0x244] ss:$8 sps:$4 sm:$0xff]  }
  0x82   :  { %1487 = vmatprep.subr.bf16.mxu1 %v2029_v61  ;;  %v2050_v61 = vld [vmem:[%s2756_s3 + $0x234] ss:$8 sps:$4 sm:$0xff]  }
  0x83   :  { %796 = vmatmul.mubr.bf16.vlgmr.msra.gmra.mxu0 %v87_v62  ;;  %v2035_v62 = vld [vmem:[%s2756_s3 + $0x84] ss:$8 sps:$4 sm:$0xff]  }
  0x84   :  { %1503 = vmatpush1.bf16.msra.mxu0 %v1940_v63  ;;  %v2033_v63 = vld [vmem:[%s2756_s3 + $0x80] ss:$8 sps:$4 sm:$0xff]  }
  0x85   :  { %1504 = vmatprep.subr.bf16.mxu0 %v1948_v5  ;;  %1488 = vmatpush2.bf16.msra.mxu1 %v2027_v60  ;;  %v185_v5 = vld [vmem:[%s2757_s2] sm:$0x3] }
  0x86   :  { %1489 = vmatprep.subr.bf16.mxu1 %v2035_v62  ;;  %v194_v10 = vrot.slane %v185_v5, %v193_v6  ;;  %v2045_v60 = vld [vmem:[%s2756_s3 + $0x240] ss:$8 sps:$4 sm:$0xff]   ;;  %v2048_v62 = vld [vmem:[%s2756_s3 + $0x230] ss:$8 sps:$4 sm:$0xff]  }
  0x88   :  { %1505 = vmatpush1.bf16.msra.mxu0 %v1946_v4  ;;  %v189_v4 = vsub.s32 0, %v2631_v2 }
  0x89   :  { %1506 = vmatprep.subr.bf16.mxu0 %v1954_v8  ;;  %1490 = vmatpush2.bf16.msra.mxu1 %v2033_v63  ;;  %v2053_v63 = vld [vmem:[%s2756_s3 + $0x224] ss:$8 sps:$4 sm:$0xff]  }
  0x8a   :  { %1545 = vmatprep.subr.bf16.mxu1 %v2038_v1  ;;  %v2051_v1 = vld [vmem:[%s2756_s3 + $0x220] ss:$8 sps:$4 sm:$0xff]  }
  0x8c   :  { %1507 = vmatpush1.bf16.msra.mxu0 %v1952_v9  ;;  %v190_v9 = vrot.slane %v185_v5, %v189_v4  ;;  %v2054_v5 = vld [vmem:[%s2756_s3 + $0x210] ss:$8 sps:$4 sm:$0xff]  }
  0x8d   :  { %1508 = vmatprep.subr.bf16.mxu0 %v1960_v12 }
  0x90   :  { %1509 = vmatpush1.bf16.msra.mxu0 %v1958_v14 }
  0x91   :  { %1510 = vmatprep.subr.bf16.mxu0 %v1966_v16 }
  0x94   :  { %1511 = vmatpush1.bf16.msra.mxu0 %v1964_v18 }
  0x95   :  { %1512 = vmatprep.subr.bf16.mxu0 %v1972_v20 }
  0x98   :  { %1513 = vmatpush1.bf16.msra.mxu0 %v1970_v22 }
  0x99   :  { %1514 = vmatprep.subr.bf16.mxu0 %v1978_v24 }
  0x9c   :  { %1515 = vmatpush1.bf16.msra.mxu0 %v1976_v26 }
  0x9d   :  { %1516 = vmatprep.subr.bf16.mxu0 %v1984_v28 }
  0xa0   :  { %1517 = vmatpush1.bf16.msra.mxu0 %v1982_v30 }
  0xa1   :  { %1518 = vmatprep.subr.bf16.mxu0 %v1990_v32 }
  0xa4   :  { %1519 = vmatpush2.bf16.msra.mxu0 %v1988_v34 }
  0xa5   :  { %1520 = vmatprep.subr.bf16.mxu0 %v1996_v36 }
  0xa8   :  { %1521 = vmatpush2.bf16.msra.mxu0 %v1994_v38 }
  0xa9   :  { %1522 = vmatprep.subr.bf16.mxu0 %v2002_v40 }
  0xac   :  { %1523 = vmatpush2.bf16.msra.mxu0 %v2000_v42 }
  0xad   :  { %1524 = vmatprep.subr.bf16.mxu0 %v2008_v44 }
  0xb0   :  { %1525 = vmatpush2.bf16.msra.mxu0 %v2006_v45 }
  0xb1   :  { %1526 = vmatprep.subr.bf16.mxu0 %v2014_v46 }
  0xb4   :  { %1527 = vmatpush2.bf16.msra.mxu0 %v2012_v47 }
  0xb5   :  { %1528 = vmatprep.subr.bf16.mxu0 %v2020_v48 }
  0xb8   :  { %1529 = vmatpush2.bf16.msra.mxu0 %v2018_v50  ;;  %v2036_v50 = vld [vmem:[%s2756_s3 + $0x270] ss:$8 sps:$4 sm:$0xff]  }
  0xb9   :  { %1530 = vmatprep.subr.bf16.mxu0 %v2026_v52 }
  0xbc   :  { %1531 = vmatpush2.bf16.msra.mxu0 %v2024_v54  ;;  %v2041_v54 = vld [vmem:[%s2756_s3 + $0x264] ss:$8 sps:$4 sm:$0xff]  }
  0xbd   :  { %1532 = vmatprep.subr.bf16.mxu0 %v2032_v56  ;;  %v2039_v56 = vld [vmem:[%s2756_s3 + $0x260] ss:$8 sps:$4 sm:$0xff]  }
  0xc0   :  { %1533 = vmatpush2.bf16.msra.mxu0 %v2030_v58  ;;  %v2042_v58 = vld [vmem:[%s2756_s3 + $0x250] ss:$8 sps:$4 sm:$0xff]  }
 0x103   :  { %v711_v3 = vpop.f32.mrf.mxu0 }
 0x104   :  { %v754_v8 = vpop.f32.mrf.mxu1  ;;  %v712_v12 = vadd.f32 %v711_v3, %v190_v9  ;;  %v2056_v3 = vld [vmem:[%s2756_s3 + $0x214] ss:$8 sps:$4 sm:$0xff]  }
 0x105   :  { %v713_v7 = vpop.f32.mrf.mxu0 }
 0x106   :  { %v756_v0 = vpop.f32.mrf.mxu1  ;;  %v714_v13 = vadd.f32 %v713_v7, %v194_v10  ;;  %v755_v16 = vadd.f32 %v754_v8, %v712_v12  ;;  %v2059_v7 = vld [vmem:[%s2756_s3 + $0x204] ss:$8 sps:$4 sm:$0xff]   ;;  %v2057_v8 = vld [vmem:[%s2756_s3 + $0x200] ss:$8 sps:$4 sm:$0xff]   ;;  %v2068_v12 = vld [vmem:[%s2756_s3 + $0x2d4] ss:$8 sps:$4 sm:$0xff]  }
 0x107   :  { %v715_v11 = vpop.f32.mrf.mxu0 }
 0x108   :  { %v758_v15 = vpop.f32.mrf.mxu1  ;;  %v716_v17 = vadd.f32 %v715_v11, %v190_v9  ;;  %v757_v20 = vadd.f32 %v756_v0, %v714_v13  ;;  %v2062_v9 = vld [vmem:[%s2756_s3 + $0x2f4] ss:$8 sps:$4 sm:$0xff]   ;;  %v2065_v11 = vld [vmem:[%s2756_s3 + $0x2e4] ss:$8 sps:$4 sm:$0xff]   ;;  %v2063_v0 = vld [vmem:[%s2756_s3 + $0x2e0] ss:$8 sps:$4 sm:$0xff]  }
 0x109   :  { %v717_v14 = vpop.f32.mrf.mxu0  ;;  %v2066_v13 = vld [vmem:[%s2756_s3 + $0x2d0] ss:$8 sps:$4 sm:$0xff]  }
 0x10a   :  { %v718_v18 = vadd.f32 %v717_v14, %v194_v10  ;;  %v760_v21 = vpop.f32.mrf.mxu1  ;;  %v759_v24 = vadd.f32 %v758_v15, %v716_v17  ;;  %v2060_v10 = vld [vmem:[%s2756_s3 + $0x2f0] ss:$8 sps:$4 sm:$0xff]   ;;  %v2071_v14 = vld [vmem:[%s2756_s3 + $0x2c4] ss:$8 sps:$4 sm:$0xff]   ;;  %v2069_v15 = vld [vmem:[%s2756_s3 + $0x2c0] ss:$8 sps:$4 sm:$0xff]  }
 0x10b   :  { %v2072_v17 = vld [vmem:[%s2756_s3 + $0x2b0] ss:$8 sps:$4 sm:$0xff]  }
 0x10c   :  { %v761_v27 = vadd.f32 %v760_v21, %v718_v18  ;;  %v2077_v18 = vld [vmem:[%s2756_s3 + $0x2a4] ss:$8 sps:$4 sm:$0xff]   ;;  %v2078_v21 = vld [vmem:[%s2756_s3 + $0x290] ss:$8 sps:$4 sm:$0xff]  }
 0x143   :  { %v797_v19 = vpop.f32.mrf.mxu0 }
 0x144   :  { %v798_v22 = vadd.f32 %v797_v19, %v755_v16  ;;  %v2074_v16 = vld [vmem:[%s2756_s3 + $0x2b4] ss:$8 sps:$4 sm:$0xff]   ;;  %v2075_v19 = vld [vmem:[%s2756_s3 + $0x2a0] ss:$8 sps:$4 sm:$0xff]  }
 0x145   :  { %v799_v23 = vpop.f32.mrf.mxu0 }
 0x146   :  { %v806_v25 = vmax.f32 %v798_v22, 0.0  ;;  %v800_v26 = vadd.f32 %v799_v23, %v757_v20  ;;  %v2080_v20 = vld [vmem:[%s2756_s3 + $0x294] ss:$8 sps:$4 sm:$0xff]   ;;  %v2083_v22 = vld [vmem:[%s2756_s3 + $0x284] ss:$8 sps:$4 sm:$0xff]  }
 0x147   :  { %v801_v28 = vpop.f32.mrf.mxu0  ;;  %v2081_v23 = vld [vmem:[%s2756_s3 + $0x280] ss:$8 sps:$4 sm:$0xff]  }
 0x148   :  { %v821_v29 = vrot.slane %v806_v25, 7  ;;  %v827_v30 = vrot.slane %v806_v25, 1  ;;  %v807_v31 = vmax.f32 %v800_v26, 0.0  ;;  %v802_v32 = vadd.f32 %v801_v28, %v759_v24  ;;  %v967_v28 = vld [vmem:[%s2758_s4] sm:$0x3] }
 0x149   :  { %v803_v33 = vpop.f32.mrf.mxu0 }
 0x14a   :  { %825 = vst [vmem:[#allocation3] sm:$0xfe] %v821_v29  ;;  %831 = vst [vmem:[#allocation3 + $0x20] sm:$0x7f] %v827_v30  ;;  %v822_v34 = vrot.slane %v807_v31, 7  ;;  %v828_v35 = vrot.slane %v807_v31, 1  ;;  %v804_v37 = vadd.f32 %v803_v33, %v761_v27  ;;  %v972_v30 = vrot.slane %v967_v28, %v189_v4 }
 0x14b   :  { %v808_v36 = vmax.f32 %v802_v32, 0.0  ;;  %v976_v32 = vrot.slane %v967_v28, %v193_v6 }
 0x14c   :  { %826 = vst [vmem:[#allocation3 + $0x8] sm:$0xfe] %v822_v34  ;;  %832 = vst [vmem:[#allocation3 + $0x28] sm:$0x7f] %v828_v35  ;;  %v809_v40 = vmax.f32 %v804_v37, 0.0 }
 0x14d   :  { %v841_v38 = vrot.slane %v808_v36, 7  ;;  %v847_v39 = vrot.slane %v808_v36, 1  ;;  %v867_v44 = vpack.c.bf16 %v808_v36, %v806_v25 }
 0x14e   :  { %v842_v41 = vrot.slane %v809_v40, 7  ;;  %v848_v42 = vrot.slane %v809_v40, 1  ;;  %v868_v43 = vpack.c.bf16 %v809_v40, %v807_v31 }
 0x14f   :  { %845 = vst [vmem:[#allocation3 + $0x30] sm:$0xfe] %v841_v38  ;;  %851 = vst [vmem:[#allocation3 + $0x50] sm:$0x7f] %v847_v39 }
 0x150   :  { %846 = vst [vmem:[#allocation3 + $0x38] sm:$0xfe] %v842_v41  ;;  %852 = vst [vmem:[#allocation3 + $0x58] sm:$0x7f] %v848_v42  ;;  %1534 = vmatprep.mubr.bf16.mxu0 %v868_v43 }
 0x151   :  { %1535 = vmatmul.mubr.bf16.vlgmr.msra.gmra.mxu0 %v867_v44  ;;  %v853_v51 = vld [vmem:[#allocation3] sm:$0xff] }
 0x152   :  { %v857_v25 = vld [vmem:[#allocation3 + $0x20] sm:$0xff] }
 0x153   :  { %v854_v46 = vld [vmem:[#allocation3 + $0x8] sm:$0xff] }
 0x154   :  { %v858_v53 = vld [vmem:[#allocation3 + $0x28] sm:$0xff] }
 0x156   :  { %v859_v45 = vld [vmem:[#allocation3 + $0x30] sm:$0xff] }
 0x157   :  { %v860_v47 = vld [vmem:[#allocation3 + $0x38] sm:$0xff]  ;;  %v865_v52 = vpack.c.bf16 %v859_v45, %v853_v51  ;;  %v863_v24 = vld [vmem:[#allocation3 + $0x50] sm:$0xff] }
 0x158   :  { %v864_v48 = vld [vmem:[#allocation3 + $0x58] sm:$0xff]  ;;  %v866_v49 = vpack.c.bf16 %v860_v47, %v854_v46  ;;  %v869_v26 = vpack.c.bf16 %v863_v24, %v857_v25  ;;  %v2084_v46 = vld [vmem:[#allocation2 + $0x10] sm:$0xff] }
 0x159   :  { %v870_v55 = vpack.c.bf16 %v864_v48, %v858_v53 }
 0x15a   :  { %1491 = vmatprep.mubr.bf16.mxu1 %v866_v49 }
 0x15b   :  { %1492 = vmatmul.mubr.bf16.vlgmr.msra.gmra.mxu1 %v865_v52 }
 0x15c   :  { %1546 = vmatpush1.bf16.msra.mxu1 %v2036_v50  ;;  %1577 = vmatprep.mubr.bf16.mxu1 %v870_v55  ;;  %v2085_v50 = vld [vmem:[#allocation2 + $0x18] sm:$0xff] }
 0x15d   :  { %1547 = vmatprep.subr.bf16.mxu1 %v2041_v54 }
 0x160   :  { %1548 = vmatpush1.bf16.msra.mxu1 %v2039_v56  ;;  %v2086_v56 = vld [vmem:[#allocation2 + $0x40] sm:$0xff] }
 0x161   :  { %1549 = vmatprep.subr.bf16.mxu1 %v2044_v57 }
 0x164   :  { %1550 = vmatpush1.bf16.msra.mxu1 %v2042_v58 }
 0x165   :  { %1551 = vmatprep.subr.bf16.mxu1 %v2047_v59 }
 0x168   :  { %1552 = vmatpush1.bf16.msra.mxu1 %v2045_v60  ;;  %v2087_v60 = vld [vmem:[#allocation2 + $0x48] sm:$0xff] }
 0x169   :  { %1553 = vmatprep.subr.bf16.mxu1 %v2050_v61 }
 0x16c   :  { %1554 = vmatpush1.bf16.msra.mxu1 %v2048_v62 }
 0x16d   :  { %1555 = vmatprep.subr.bf16.mxu1 %v2053_v63 }
 0x170   :  { %1556 = vmatpush1.bf16.msra.mxu1 %v2051_v1 }
 0x171   :  { %1557 = vmatprep.subr.bf16.mxu1 %v2056_v3 }
 0x174   :  { %1558 = vmatpush1.bf16.msra.mxu1 %v2054_v5 }
 0x175   :  { %1559 = vmatprep.subr.bf16.mxu1 %v2059_v7 }
 0x178   :  { %1560 = vmatpush1.bf16.msra.mxu1 %v2057_v8 }
 0x179   :  { %1561 = vmatprep.subr.bf16.mxu1 %v2062_v9 }
 0x17c   :  { %1562 = vmatpush2.bf16.msra.mxu1 %v2060_v10 }
 0x17d   :  { %1563 = vmatprep.subr.bf16.mxu1 %v2065_v11 }
 0x180   :  { %1564 = vmatpush2.bf16.msra.mxu1 %v2063_v0 }
 0x181   :  { %1565 = vmatprep.subr.bf16.mxu1 %v2068_v12 }
 0x184   :  { %1566 = vmatpush2.bf16.msra.mxu1 %v2066_v13 }
 0x185   :  { %1567 = vmatprep.subr.bf16.mxu1 %v2071_v14 }
 0x188   :  { %1568 = vmatpush2.bf16.msra.mxu1 %v2069_v15 }
 0x189   :  { %1569 = vmatprep.subr.bf16.mxu1 %v2074_v16 }
 0x18c   :  { %1570 = vmatpush2.bf16.msra.mxu1 %v2072_v17 }
 0x18d   :  { %1571 = vmatprep.subr.bf16.mxu1 %v2077_v18 }
 0x190   :  { %1572 = vmatpush2.bf16.msra.mxu1 %v2075_v19 }
 0x191   :  { %1573 = vmatprep.subr.bf16.mxu1 %v2080_v20 }
 0x194   :  { %1574 = vmatpush2.bf16.msra.mxu1 %v2078_v21 }
 0x195   :  { %1575 = vmatprep.subr.bf16.mxu1 %v2083_v22 }
 0x198   :  { %1576 = vmatpush2.bf16.msra.mxu1 %v2081_v23 }
 0x19b   :  { %1578 = vmatmul.mubr.bf16.vlgmr.msra.gmra.mxu1 %v869_v26 }
 0x211   :  { %v1536_v31 = vpop.f32.mrf.mxu0 }
 0x213   :  { %v1538_v35 = vpop.f32.mrf.mxu0 }
 0x215   :  { %v1540_v40 = vpop.f32.mrf.mxu0 }
 0x217   :  { %v1542_v49 = vpop.f32.mrf.mxu0 }
 0x21b   :  { %v1493_v27 = vpop.f32.mrf.mxu1 }
 0x21c   :  { %v1494_v34 = vadd.f32 %v1493_v27, %v972_v30 }
 0x21d   :  { %v1495_v29 = vpop.f32.mrf.mxu1 }
 0x21e   :  { %v1496_v36 = vadd.f32 %v1495_v29, %v976_v32  ;;  %v1537_v39 = vadd.f32 %v1536_v31, %v1494_v34 }
 0x21f   :  { %v1497_v33 = vpop.f32.mrf.mxu1 }
 0x220   :  { %v1498_v38 = vadd.f32 %v1497_v33, %v972_v30  ;;  %v1539_v44 = vadd.f32 %v1538_v35, %v1496_v36 }
 0x221   :  { %v1499_v37 = vpop.f32.mrf.mxu1 }
 0x222   :  { %v1500_v42 = vadd.f32 %v1499_v37, %v976_v32  ;;  %v1541_v48 = vadd.f32 %v1540_v40, %v1498_v38 }
 0x224   :  { %v1543_v53 = vadd.f32 %v1542_v49, %v1500_v42 }
 0x25b   :  { %v1579_v41 = vpop.f32.mrf.mxu1 }
 0x25c   :  { %v1580_v43 = vadd.f32 %v1579_v41, %v1537_v39 }
 0x25d   :  { %v1581_v45 = vpop.f32.mrf.mxu1 }
 0x25e   :  { %v1588_v47 = vadd.f32 %v2084_v46, %v1580_v43  ;;  %v1582_v4 = vadd.f32 %v1581_v45, %v1539_v44 }
 0x25f   :  { %v1583_v2 = vpop.f32.mrf.mxu1 }
 0x260   :  { %v1592_v6 = vmax.f32 %v1588_v47, 0.0  ;;  %v1589_v51 = vadd.f32 %v2085_v50, %v1582_v4  ;;  %v1584_v52 = vadd.f32 %v1583_v2, %v1541_v48 }
 0x261   :  { %v1585_v54 = vpop.f32.mrf.mxu1 }
 0x262   :  { %1596 = vst [vmem:[%s2759_s5] sm:$0xff] %v1592_v6  ;;  %v1593_v55 = vmax.f32 %v1589_v51, 0.0  ;;  %v1590_v57 = vadd.f32 %v2086_v56, %v1584_v52  ;;  %v1586_v58 = vadd.f32 %v1585_v54, %v1543_v53 }
 0x264   :  { %1597 = vst [vmem:[%s2759_s5 + $0x8] sm:$0xff] %v1593_v55  ;;  %v1594_v59 = vmax.f32 %v1590_v57, 0.0  ;;  %v1591_v61 = vadd.f32 %v2087_v60, %v1586_v58 }
 0x266   :  { %1598 = vst [vmem:[%s2759_s5 + $0x10] sm:$0xff] %v1594_v59  ;;  %v1595_v62 = vmax.f32 %v1591_v61, 0.0 }
 0x268   :  { %1599 = vst [vmem:[%s2759_s5 + $0x18] sm:$0xff] %v1595_v62 }

</bundles_post_ra>
